<compile_context>
chip_gen: v7x
topology: tpu7x:2x2x1
jax: 0.10.0
libtpu: 0.0.40
codegen_flags: <defaults>
</compile_context>

<pallas_src>
import functools

import jax
import jax.numpy as jnp
from jax.experimental import pallas as pl
from jax.experimental.pallas import tpu as pltpu

LANE = 128                      # pad feature dims to 128 lanes (lane-dense vst)
_TILE_CANDIDATES = (2048, 1024, 512, 256, 128)
_MiB = 1024 * 1024
_X_TILE_BUDGET = 8 * _MiB       # double-buffered bf16 X tile budget
_ROW_TILE_BUDGET = 16 * _MiB    # f32 acc + double-buffered output budget


def _round_up(x, m):
    return ((x + m - 1) // m) * m


def _choose_row_tile(n, max_f_out_pad, max_out_itemsize):
    """Row tile tm (shared by all layers) and padded node count."""
    n128 = _round_up(n, 128)
    tm = None
    for c in _TILE_CANDIDATES:          # prefer >= 2 row tiles (v7x megacore)
        if 2 * c <= n128:
            tm = c
            break
    if tm is None:
        for c in _TILE_CANDIDATES:      # tiny graph: single row tile
            if c <= n128:
                tm = c
                break
    # keep f32 accumulator + double-buffered output tiles under budget
    while tm > 128 and tm * max_f_out_pad * (4 + 2 * max_out_itemsize) > _ROW_TILE_BUDGET:
        tm //= 2
    n_pad = _round_up(n, tm)
    return tm, n_pad


def _choose_k_tile(tm, f_in_pad):
    """Reduction (column) tile; capped so the streamed X tile fits VMEM."""
    for c in _TILE_CANDIDATES:
        if c <= tm and c * f_in_pad * 2 * 2 <= _X_TILE_BUDGET:
            return c
    return 128


# ---------------------------------------------------------------------------
# Fused GCN layer kernel:  out = relu?(A_hat @ (X @ W) + b)
#   grid = (row tiles, k reduction tiles); f32 VMEM accumulator per row tile.
#   W and bias are VMEM-resident; X tiles / A_hat tiles are streamed.
# ---------------------------------------------------------------------------
def _gcn_layer_kernel(a_ref, x_ref, w_ref, b_ref, o_ref, acc_ref, *, apply_relu):
    k = pl.program_id(1)

    @pl.when(k == 0)
    def _():
        acc_ref[...] = jnp.zeros_like(acc_ref)

    # Fused feature transform for this k-slab (recompute is free: mem-bound).
    xw = jnp.dot(
        x_ref[...], w_ref[...], preferred_element_type=jnp.float32
    ).astype(jnp.bfloat16)
    acc_ref[...] += jnp.dot(a_ref[...], xw, preferred_element_type=jnp.float32)

    @pl.when(k == pl.num_programs(1) - 1)
    def _():
        out = acc_ref[...] + b_ref[...]
        if apply_relu:
            out = jnp.maximum(out, 0.0)
        o_ref[...] = out.astype(o_ref.dtype)


def gcn_layer(a_pad, h, w_pad, b_pad, *, tm, apply_relu, out_dtype):
    n_pad = a_pad.shape[0]
    f_in_pad, f_out_pad = w_pad.shape
    tk = _choose_k_tile(tm, f_in_pad)
    out_itemsize = jnp.dtype(out_dtype).itemsize

    vmem_need = (
        2 * tm * tk * 2                       # A_hat tiles (bf16, double-buffered)
        + 2 * tk * f_in_pad * 2               # X tiles
        + 2 * f_in_pad * f_out_pad * 2        # resident W
        + 2 * f_out_pad * 4                   # resident bias
        + tm * f_out_pad * 4                  # f32 accumulator scratch
        + 2 * tm * f_out_pad * out_itemsize   # output tiles
    )
    vmem_limit = int(min(56 * _MiB, max(32 * _MiB, vmem_need + 4 * _MiB)))

    kernel = functools.partial(_gcn_layer_kernel, apply_relu=apply_relu)
    return pl.pallas_call(
        kernel,
        out_shape=jax.ShapeDtypeStruct((n_pad, f_out_pad), out_dtype),
        grid=(n_pad // tm, n_pad // tk),
        in_specs=[
            pl.BlockSpec((tm, tk), lambda i, k: (i, k)),               # A_hat tile
            pl.BlockSpec((tk, f_in_pad), lambda i, k: (k, 0)),         # X tile
            pl.BlockSpec((f_in_pad, f_out_pad), lambda i, k: (0, 0)),  # W (resident)
            pl.BlockSpec((1, f_out_pad), lambda i, k: (0, 0)),         # bias (resident)
        ],
        out_specs=pl.BlockSpec((tm, f_out_pad), lambda i, k: (i, 0)),
        scratch_shapes=[pltpu.VMEM((tm, f_out_pad), jnp.float32)],
        compiler_params=pltpu.CompilerParams(
            dimension_semantics=("parallel", "arbitrary"),
            vmem_limit_bytes=vmem_limit,
        ),
        cost_estimate=pl.CostEstimate(
            flops=2 * n_pad * n_pad * f_out_pad
            + 2 * (n_pad // tm) * n_pad * f_in_pad * f_out_pad,
            transcendentals=0,
            bytes_accessed=n_pad * n_pad * 2                     # A_hat, dominant
            + (n_pad // tm) * n_pad * f_in_pad * 2               # X re-read per row tile
            + n_pad * f_out_pad * out_itemsize                   # output
            + f_in_pad * f_out_pad * 2,                          # W
        ),
    )(a_pad, h, w_pad, b_pad)


# ---------------------------------------------------------------------------
# Glue: dense normalized adjacency (GCN normalization with self-loops).
# Note: duplicate edges are scatter-summed (matches un-coalesced edge_index).
# ---------------------------------------------------------------------------
def build_normalized_adjacency(edge_index, num_nodes):
    src, dst = edge_index[0], edge_index[1]
    loops = jnp.arange(num_nodes, dtype=edge_index.dtype)
    src = jnp.concatenate([src, loops])
    dst = jnp.concatenate([dst, loops])
    deg = jnp.zeros((num_nodes,), jnp.float32).at[dst].add(1.0)
    deg_inv_sqrt = jnp.where(deg > 0, jax.lax.rsqrt(deg), 0.0)
    norm = deg_inv_sqrt[dst] * deg_inv_sqrt[src]
    a_hat = jnp.zeros((num_nodes, num_nodes), jnp.float32)
    a_hat = a_hat.at[dst, src].add(norm)
    return a_hat


# ---------------------------------------------------------------------------
# GCNLarge forward (inference: dropout p=0.5 with training=False is identity)
# ---------------------------------------------------------------------------
def gcn_large_forward(x, edge_index, params):
    n, f_in = x.shape
    num_classes = params[-1][0].shape[1]

    max_f_out_pad = max(_round_up(w.shape[1], LANE) for w, _ in params)
    tm, n_pad = _choose_row_tile(n, max_f_out_pad, 4)  # last layer writes f32

    # Normalized adjacency, zero-padded to the tile grid, carried in bf16.
    a_hat = build_normalized_adjacency(edge_index, n)
    a_pad = (
        jnp.zeros((n_pad, n_pad), jnp.float32)
        .at[:n, :n]
        .set(a_hat)
        .astype(jnp.bfloat16)
    )

    # Node features, zero-padded to 128 lanes / n_pad rows, carried in bf16.
    f_in_pad = _round_up(f_in, LANE)
    h = (
        jnp.zeros((n_pad, f_in_pad), jnp.bfloat16)
        .at[:n, :f_in]
        .set(x.astype(jnp.bfloat16))
    )

    num_layers = len(params)
    for li, (w, b) in enumerate(params):
        is_last = li == num_layers - 1
        fi, fo = w.shape
        fi_pad = _round_up(fi, LANE)
        fo_pad = _round_up(fo, LANE)
        assert fi_pad == h.shape[1]
        w_pad = (
            jnp.zeros((fi_pad, fo_pad), jnp.bfloat16)
            .at[:fi, :fo]
            .set(w.astype(jnp.bfloat16))
        )
        b2 = jnp.reshape(jnp.asarray(b, jnp.float32), (1, -1))  # accept 1-D or 2-D
        b_pad = jnp.zeros((1, fo_pad), jnp.float32).at[:, :fo].set(b2)

        h = gcn_layer(
            a_pad,
            h,
            w_pad,
            b_pad,
            tm=tm,
            apply_relu=not is_last,
            out_dtype=jnp.float32 if is_last else jnp.bfloat16,
        )

    return h[:n, :num_classes]


def init_params(key, num_node_features, hidden_channels, num_classes):
    dims = [num_node_features] + [hidden_channels] * 4 + [num_classes]
    params = []
    for i in range(5):
        key, kw = jax.random.split(key)
        fan_in, fan_out = dims[i], dims[i + 1]
        # Glorot-uniform weights (PyG GCNConv default), zero bias.
        limit = (6.0 / (fan_in + fan_out)) ** 0.5
        w = jax.random.uniform(kw, (fan_in, fan_out), jnp.float32, -limit, limit)
        b = jnp.zeros((fan_out,), jnp.float32)
        params.append((w, b))
    return params


if __name__ == "__main__":
    key = jax.random.PRNGKey(0)

    # Small synthetic graph consistent with the module's forward.
    num_nodes = 16
    num_node_features = 8
    hidden_channels = 32
    num_classes = 3
    num_edges = 40

    k_x, k_e, k_p = jax.random.split(key, 3)
    x = jax.random.normal(k_x, (num_nodes, num_node_features), jnp.float32)
    edge_index = jax.random.randint(k_e, (2, num_edges), 0, num_nodes, jnp.int32)

    params = init_params(k_p, num_node_features, hidden_channels, num_classes)

    out = jax.jit(gcn_large_forward)(x, edge_index, params)
    out = jax.block_until_ready(out)
    assert out.shape == (num_nodes, num_classes)
    assert bool(jnp.all(jnp.isfinite(out)))
    print("KERNEL_OK")
</pallas_src>

<mosaic_0001>
module attributes {stable_mosaic.version = 11 : i64} {
  func.func @_gcn_layer_kernel(%arg0: i32, %arg1: i32, %arg2: memref<128x128xbf16, #tpu.memory_space<vmem>>, %arg3: memref<128x128xbf16, #tpu.memory_space<vmem>>, %arg4: memref<128x128xbf16, #tpu.memory_space<vmem>>, %arg5: memref<1x128xf32, #tpu.memory_space<vmem>>, %arg6: memref<128x128xbf16, #tpu.memory_space<vmem>>, %arg7: memref<128x128xf32, #tpu.memory_space<vmem>>) attributes {dimension_semantics = [#tpu.dimension_semantics<parallel>, #tpu.dimension_semantics<arbitrary>], iteration_bounds = array<i64: 1, 1>, scalar_prefetch = 0 : i64, scratch_operands = 1 : i64, tpu.core_type = #tpu.core_type<tc>, window_params = [{transform_indices = @transform_0, window_bounds = array<i64: 128, 128>}, {transform_indices = @transform_1, window_bounds = array<i64: 128, 128>}, {pipeline_mode = #tpu.pipeline_mode<synchronous>, transform_indices = @transform_2, window_bounds = array<i64: 128, 128>}, {pipeline_mode = #tpu.pipeline_mode<synchronous>, transform_indices = @transform_3, window_bounds = array<i64: 1, 128>}, {transform_indices = @transform_4, window_bounds = array<i64: 128, 128>}]} {
    %c0_i32 = arith.constant 0 : i32
    %0 = arith.cmpi eq, %arg1, %c0_i32 : i32
    %1 = arith.extui %0 : i1 to i32
    %c0_i32_0 = arith.constant 0 : i32
    %2 = arith.cmpi ne, %1, %c0_i32_0 : i32
    scf.if %2 {
      %cst_13 = arith.constant 0.000000e+00 : f32
      %15 = vector.broadcast %cst_13 : f32 to vector<128x128xf32>
      %c0_14 = arith.constant 0 : index
      %c0_15 = arith.constant 0 : index
      %16 = vector.load %arg7[%c0_14, %c0_15] : memref<128x128xf32, #tpu.memory_space<vmem>>, vector<128x128xf32>
      tpu.vector_store %arg7[%c0_14, %c0_15], %15 {strides = array<i32>} : memref<128x128xf32, #tpu.memory_space<vmem>>, vector<128x128xf32>,
    } else {
    }
    %c0 = arith.constant 0 : index
    %c0_1 = arith.constant 0 : index
    %3 = vector.load %arg3[%c0, %c0_1] : memref<128x128xbf16, #tpu.memory_space<vmem>>, vector<128x128xbf16>
    %c0_2 = arith.constant 0 : index
    %c0_3 = arith.constant 0 : index
    %4 = vector.load %arg4[%c0_2, %c0_3] : memref<128x128xbf16, #tpu.memory_space<vmem>>, vector<128x128xbf16>
    %cst = arith.constant dense<0.000000e+00> : vector<128x128xf32>
    %5 = tpu.matmul %3, %4, %cst {dimension_numbers = #tpu.dot_dimension_numbers<[1], [0], [0], [1], [0, 0, 1, 1], [], []>} : vector<128x128xbf16>, vector<128x128xbf16>, vector<128x128xf32> -> vector<128x128xf32>
    %6 = arith.truncf %5 : vector<128x128xf32> to vector<128x128xbf16>
    %c0_4 = arith.constant 0 : index
    %c0_5 = arith.constant 0 : index
    %7 = vector.load %arg7[%c0_4, %c0_5] : memref<128x128xf32, #tpu.memory_space<vmem>>, vector<128x128xf32>
    %c0_6 = arith.constant 0 : index
    %c0_7 = arith.constant 0 : index
    %8 = vector.load %arg2[%c0_6, %c0_7] : memref<128x128xbf16, #tpu.memory_space<vmem>>, vector<128x128xbf16>
    %cst_8 = arith.constant dense<0.000000e+00> : vector<128x128xf32>
    %9 = tpu.matmul %8, %6, %cst_8 {dimension_numbers = #tpu.dot_dimension_numbers<[1], [0], [0], [1], [0, 0, 1, 1], [], []>} : vector<128x128xbf16>, vector<128x128xbf16>, vector<128x128xf32> -> vector<128x128xf32>
    %10 = arith.addf %7, %9 : vector<128x128xf32>
    %c0_9 = arith.constant 0 : index
    %c0_10 = arith.constant 0 : index
    %11 = vector.load %arg7[%c0_9, %c0_10] : memref<128x128xf32, #tpu.memory_space<vmem>>, vector<128x128xf32>
    tpu.vector_store %arg7[%c0_9, %c0_10], %10 {strides = array<i32>} : memref<128x128xf32, #tpu.memory_space<vmem>>, vector<128x128xf32>,
    %c0_i32_11 = arith.constant 0 : i32
    %12 = arith.cmpi eq, %arg1, %c0_i32_11 : i32
    %13 = arith.extui %12 : i1 to i32
    %c0_i32_12 = arith.constant 0 : i32
    %14 = arith.cmpi ne, %13, %c0_i32_12 : i32
    scf.if %14 {
      %c0_13 = arith.constant 0 : index
      %c0_14 = arith.constant 0 : index
      %15 = vector.load %arg7[%c0_13, %c0_14] : memref<128x128xf32, #tpu.memory_space<vmem>>, vector<128x128xf32>
      %c0_15 = arith.constant 0 : index
      %c0_16 = arith.constant 0 : index
      %16 = vector.load %arg5[%c0_15, %c0_16] : memref<1x128xf32, #tpu.memory_space<vmem>>, vector<1x128xf32>
      %17 = vector.broadcast %16 : vector<1x128xf32> to vector<128x128xf32>
      %18 = arith.addf %15, %17 : vector<128x128xf32>
      %cst_17 = arith.constant 0.000000e+00 : f32
      %19 = vector.broadcast %cst_17 : f32 to vector<128x128xf32>
      %20 = arith.maximumf %18, %19 : vector<128x128xf32>
      %21 = arith.truncf %20 : vector<128x128xf32> to vector<128x128xbf16>
      %c0_18 = arith.constant 0 : index
      %c0_19 = arith.constant 0 : index
      %22 = vector.load %arg6[%c0_18, %c0_19] : memref<128x128xbf16, #tpu.memory_space<vmem>>, vector<128x128xbf16>
      tpu.vector_store %arg6[%c0_18, %c0_19], %21 {strides = array<i32>} : memref<128x128xbf16, #tpu.memory_space<vmem>>, vector<128x128xbf16>,
    } else {
    }
    return
  }
  func.func @transform_0(%arg0: i32, %arg1: i32) -> (i32, i32) {
    %c0_i32 = arith.constant 0 : i32
    return %arg0, %arg1 : i32, i32
  }
  func.func @transform_1(%arg0: i32, %arg1: i32) -> (i32, i32) {
    %c0_i32 = arith.constant 0 : i32
    %c0_i32_0 = arith.constant 0 : i32
    return %arg1, %c0_i32 : i32, i32
  }
  func.func @transform_2(%arg0: i32, %arg1: i32) -> (i32, i32) {
    %c0_i32 = arith.constant 0 : i32
    %c0_i32_0 = arith.constant 0 : i32
    %c0_i32_1 = arith.constant 0 : i32
    return %c0_i32, %c0_i32_0 : i32, i32
  }
  func.func @transform_3(%arg0: i32, %arg1: i32) -> (i32, i32) {
    %c0_i32 = arith.constant 0 : i32
    %c0_i32_0 = arith.constant 0 : i32
    %c0_i32_1 = arith.constant 0 : i32
    return %c0_i32, %c0_i32_0 : i32, i32
  }
  func.func @transform_4(%arg0: i32, %arg1: i32) -> (i32, i32) {
    %c0_i32 = arith.constant 0 : i32
    %c0_i32_0 = arith.constant 0 : i32
    return %arg0, %c0_i32 : i32, i32
  }
}

module attributes {stable_mosaic.version = 11 : i64} {
  func.func @_gcn_layer_kernel(%arg0: i32, %arg1: i32, %arg2: memref<128x128xbf16, #tpu.memory_space<vmem>>, %arg3: memref<128x128xbf16, #tpu.memory_space<vmem>>, %arg4: memref<128x128xbf16, #tpu.memory_space<vmem>>, %arg5: memref<1x128xf32, #tpu.memory_space<vmem>>, %arg6: memref<128x128xf32, #tpu.memory_space<vmem>>, %arg7: memref<128x128xf32, #tpu.memory_space<vmem>>) attributes {dimension_semantics = [#tpu.dimension_semantics<parallel>, #tpu.dimension_semantics<arbitrary>], iteration_bounds = array<i64: 1, 1>, scalar_prefetch = 0 : i64, scratch_operands = 1 : i64, tpu.core_type = #tpu.core_type<tc>, window_params = [{transform_indices = @transform_0, window_bounds = array<i64: 128, 128>}, {transform_indices = @transform_1, window_bounds = array<i64: 128, 128>}, {pipeline_mode = #tpu.pipeline_mode<synchronous>, transform_indices = @transform_2, window_bounds = array<i64: 128, 128>}, {pipeline_mode = #tpu.pipeline_mode<synchronous>, transform_indices = @transform_3, window_bounds = array<i64: 1, 128>}, {transform_indices = @transform_4, window_bounds = array<i64: 128, 128>}]} {
    %c0_i32 = arith.constant 0 : i32
    %0 = arith.cmpi eq, %arg1, %c0_i32 : i32
    %1 = arith.extui %0 : i1 to i32
    %c0_i32_0 = arith.constant 0 : i32
    %2 = arith.cmpi ne, %1, %c0_i32_0 : i32
    scf.if %2 {
      %cst_13 = arith.constant 0.000000e+00 : f32
      %15 = vector.broadcast %cst_13 : f32 to vector<128x128xf32>
      %c0_14 = arith.constant 0 : index
      %c0_15 = arith.constant 0 : index
      %16 = vector.load %arg7[%c0_14, %c0_15] : memref<128x128xf32, #tpu.memory_space<vmem>>, vector<128x128xf32>
      tpu.vector_store %arg7[%c0_14, %c0_15], %15 {strides = array<i32>} : memref<128x128xf32, #tpu.memory_space<vmem>>, vector<128x128xf32>,
    } else {
    }
    %c0 = arith.constant 0 : index
    %c0_1 = arith.constant 0 : index
    %3 = vector.load %arg3[%c0, %c0_1] : memref<128x128xbf16, #tpu.memory_space<vmem>>, vector<128x128xbf16>
    %c0_2 = arith.constant 0 : index
    %c0_3 = arith.constant 0 : index
    %4 = vector.load %arg4[%c0_2, %c0_3] : memref<128x128xbf16, #tpu.memory_space<vmem>>, vector<128x128xbf16>
    %cst = arith.constant dense<0.000000e+00> : vector<128x128xf32>
    %5 = tpu.matmul %3, %4, %cst {dimension_numbers = #tpu.dot_dimension_numbers<[1], [0], [0], [1], [0, 0, 1, 1], [], []>} : vector<128x128xbf16>, vector<128x128xbf16>, vector<128x128xf32> -> vector<128x128xf32>
    %6 = arith.truncf %5 : vector<128x128xf32> to vector<128x128xbf16>
    %c0_4 = arith.constant 0 : index
    %c0_5 = arith.constant 0 : index
    %7 = vector.load %arg7[%c0_4, %c0_5] : memref<128x128xf32, #tpu.memory_space<vmem>>, vector<128x128xf32>
    %c0_6 = arith.constant 0 : index
    %c0_7 = arith.constant 0 : index
    %8 = vector.load %arg2[%c0_6, %c0_7] : memref<128x128xbf16, #tpu.memory_space<vmem>>, vector<128x128xbf16>
    %cst_8 = arith.constant dense<0.000000e+00> : vector<128x128xf32>
    %9 = tpu.matmul %8, %6, %cst_8 {dimension_numbers = #tpu.dot_dimension_numbers<[1], [0], [0], [1], [0, 0, 1, 1], [], []>} : vector<128x128xbf16>, vector<128x128xbf16>, vector<128x128xf32> -> vector<128x128xf32>
    %10 = arith.addf %7, %9 : vector<128x128xf32>
    %c0_9 = arith.constant 0 : index
    %c0_10 = arith.constant 0 : index
    %11 = vector.load %arg7[%c0_9, %c0_10] : memref<128x128xf32, #tpu.memory_space<vmem>>, vector<128x128xf32>
    tpu.vector_store %arg7[%c0_9, %c0_10], %10 {strides = array<i32>} : memref<128x128xf32, #tpu.memory_space<vmem>>, vector<128x128xf32>,
    %c0_i32_11 = arith.constant 0 : i32
    %12 = arith.cmpi eq, %arg1, %c0_i32_11 : i32
    %13 = arith.extui %12 : i1 to i32
    %c0_i32_12 = arith.constant 0 : i32
    %14 = arith.cmpi ne, %13, %c0_i32_12 : i32
    scf.if %14 {
      %c0_13 = arith.constant 0 : index
      %c0_14 = arith.constant 0 : index
      %15 = vector.load %arg7[%c0_13, %c0_14] : memref<128x128xf32, #tpu.memory_space<vmem>>, vector<128x128xf32>
      %c0_15 = arith.constant 0 : index
      %c0_16 = arith.constant 0 : index
      %16 = vector.load %arg5[%c0_15, %c0_16] : memref<1x128xf32, #tpu.memory_space<vmem>>, vector<1x128xf32>
      %17 = vector.broadcast %16 : vector<1x128xf32> to vector<128x128xf32>
      %18 = arith.addf %15, %17 : vector<128x128xf32>
      %c0_17 = arith.constant 0 : index
      %c0_18 = arith.constant 0 : index
      %19 = vector.load %arg6[%c0_17, %c0_18] : memref<128x128xf32, #tpu.memory_space<vmem>>, vector<128x128xf32>
      tpu.vector_store %arg6[%c0_17, %c0_18], %18 {strides = array<i32>} : memref<128x128xf32, #tpu.memory_space<vmem>>, vector<128x128xf32>,
    } else {
    }
    return
  }
  func.func @transform_0(%arg0: i32, %arg1: i32) -> (i32, i32) {
    %c0_i32 = arith.constant 0 : i32
    return %arg0, %arg1 : i32, i32
  }
  func.func @transform_1(%arg0: i32, %arg1: i32) -> (i32, i32) {
    %c0_i32 = arith.constant 0 : i32
    %c0_i32_0 = arith.constant 0 : i32
    return %arg1, %c0_i32 : i32, i32
  }
  func.func @transform_2(%arg0: i32, %arg1: i32) -> (i32, i32) {
    %c0_i32 = arith.constant 0 : i32
    %c0_i32_0 = arith.constant 0 : i32
    %c0_i32_1 = arith.constant 0 : i32
    return %c0_i32, %c0_i32_0 : i32, i32
  }
  func.func @transform_3(%arg0: i32, %arg1: i32) -> (i32, i32) {
    %c0_i32 = arith.constant 0 : i32
    %c0_i32_0 = arith.constant 0 : i32
    %c0_i32_1 = arith.constant 0 : i32
    return %c0_i32, %c0_i32_0 : i32, i32
  }
  func.func @transform_4(%arg0: i32, %arg1: i32) -> (i32, i32) {
    %c0_i32 = arith.constant 0 : i32
    %c0_i32_0 = arith.constant 0 : i32
    return %arg0, %c0_i32 : i32, i32
  }
}

</mosaic_0001>

<bundles_post_ra>
// kernel: mul.1
= control target key start
LH: loop header
LB: loop body
LE: loop exit
PB: predicated region body
PF: predicated region fallthrough
CT: control target
= control target key end

     0   :  { %s34_s0 = inlined_call_operand.vmem [shape: f32[56], index: 0, kind: input, shape index: {}]   ;;  %s35_s1 = inlined_call_operand.vmem [shape: f32[56], index: 1, kind: input, shape index: {}]   ;;  %s36_s2 = inlined_call_operand.vmem [shape: f32[56], index: 2, kind: output, shape index: {}]  }
   0x1   :  { %v3_v0 = vld [vmem:[%s34_s0] sm:$0x1] }
   0x2   :  { %v4_v1 = vld [vmem:[%s35_s1] sm:$0x1] }
   0x3   :  { %v7_v2 = vmul.f32 %v4_v1, %v3_v0 }
   0x5   :  { %9 = vst [vmem:[%s36_s2] sm:$0x1] %v7_v2 }

// kernel: gcn_large_forward.9
= control target key start
LH: loop header
LB: loop body
LE: loop exit
PB: predicated region body
PF: predicated region fallthrough
CT: control target
= control target key end

     0   :  { %s835_s2 = inlined_call_operand.vmem [shape: bf16[128,128], index: 2, kind: input, shape index: {}]   ;;  %s836_s1 = inlined_call_operand.vmem [shape: bf16[128,128], index: 1, kind: input, shape index: {}]   ;;  %s837_s0 = inlined_call_operand.vmem [shape: bf16[128,128], index: 0, kind: input, shape index: {}]   ;;  %s838_s3 = inlined_call_operand.vmem [shape: f32[1,128], index: 3, kind: input, shape index: {}]   ;;  %s839_s4 = inlined_call_operand.vmem [shape: f32[128,128], index: 4, kind: output, shape index: {}]  }
   0x1   :  { %v663_v0 = vld [vmem:[%s835_s2] sm:$0xff]   ;;  %v664_v1 = vld [vmem:[%s835_s2 + $0x8] sm:$0xff]   ;;  %v665_v2 = vld [vmem:[%s835_s2 + $0x10] sm:$0xff]  }
   0x2   :  { %599 = vmatprep.subr.bf16.mxu0 %v663_v0  ;;  %v666_v3 = vld [vmem:[%s835_s2 + $0x18] sm:$0xff]   ;;  %v671_v4 = vld [vmem:[%s836_s1] sm:$0xff]   ;;  %v668_v6 = vld [vmem:[%s835_s2 + $0x28] sm:$0xff]  }
   0x3   :  { %600 = vmatpush3.bf16.msra.mxu0 %v663_v0  ;;  %615 = vmatprep.mubr.bf16.mxu0 %v671_v4  ;;  %v667_v5 = vld [vmem:[%s835_s2 + $0x20] sm:$0xff]   ;;  %v669_v7 = vld [vmem:[%s835_s2 + $0x30] sm:$0xff]   ;;  %v670_v8 = vld [vmem:[%s835_s2 + $0x38] sm:$0xff]  }
   0x4   :  { %601 = vmatprep.subr.bf16.mxu0 %v664_v1  ;;  %v672_v9 = vld [vmem:[%s836_s1 + $0x8] sm:$0xff]   ;;  %v673_v10 = vld [vmem:[%s836_s1 + $0x10] sm:$0xff]   ;;  %v674_v11 = vld [vmem:[%s836_s1 + $0x18] sm:$0xff]  }
   0x5   :  { %v675_v12 = vld [vmem:[%s836_s1 + $0x20] sm:$0xff]   ;;  %v676_v13 = vld [vmem:[%s836_s1 + $0x28] sm:$0xff]   ;;  %v677_v14 = vld [vmem:[%s836_s1 + $0x30] sm:$0xff]  }
   0x6   :  { %v678_v15 = vld [vmem:[%s836_s1 + $0x38] sm:$0xff]   ;;  %v679_v16 = vld [vmem:[%s837_s0] sm:$0xff]   ;;  %v680_v41 = vld [vmem:[%s837_s0 + $0x8] sm:$0xff]  }
   0x7   :  { %602 = vmatpush3.bf16.msra.mxu0 %v664_v1  ;;  %647 = vmatprep.mubr.bf16.mxu1 %v679_v16  ;;  %v681_v42 = vld [vmem:[%s837_s0 + $0x10] sm:$0xff]   ;;  %v682_v43 = vld [vmem:[%s837_s0 + $0x18] sm:$0xff]   ;;  %v683_v44 = vld [vmem:[%s837_s0 + $0x20] sm:$0xff]  }
   0x8   :  { %603 = vmatprep.subr.bf16.mxu0 %v665_v2  ;;  %v684_v45 = vld [vmem:[%s837_s0 + $0x28] sm:$0xff]   ;;  %v685_v46 = vld [vmem:[%s837_s0 + $0x30] sm:$0xff]   ;;  %v686_v47 = vld [vmem:[%s837_s0 + $0x38] sm:$0xff]  }
   0x9   :  { %v566_v48 = vld [vmem:[%s838_s3] ss:$0 sm:$0xff] }
   0xb   :  { %604 = vmatpush3.bf16.msra.mxu0 %v665_v2 }
   0xc   :  { %605 = vmatprep.subr.bf16.mxu0 %v666_v3 }
   0xf   :  { %606 = vmatpush3.bf16.msra.mxu0 %v666_v3 }
  0x10   :  { %607 = vmatprep.subr.bf16.mxu0 %v667_v5 }
  0x13   :  { %608 = vmatpush3.bf16.msra.mxu0 %v667_v5 }
  0x14   :  { %609 = vmatprep.subr.bf16.mxu0 %v668_v6 }
  0x17   :  { %610 = vmatpush3.bf16.msra.mxu0 %v668_v6 }
  0x18   :  { %611 = vmatprep.subr.bf16.mxu0 %v669_v7 }
  0x1b   :  { %612 = vmatpush3.bf16.msra.mxu0 %v669_v7 }
  0x1c   :  { %613 = vmatprep.subr.bf16.mxu0 %v670_v8 }
  0x1f   :  { %614 = vmatpush3.bf16.msra.mxu0 %v670_v8 }
  0x22   :  { %616 = vmatmul.mubr.bf16.vlgmr.msra.gmra.mrb[0].mxu0 %v672_v9 }
  0x23   :  { %619 = vmatprep.mubr.bf16.mxu0 %v673_v10 }
  0x2a   :  { %620 = vmatmul.mubr.bf16.gmra.mrb[4].mxu0 %v674_v11 }
  0x2b   :  { %623 = vmatprep.mubr.bf16.mxu0 %v675_v12 }
  0x32   :  { %624 = vmatmul.mubr.bf16.gmra.mrb[8].mxu0 %v676_v13 }
  0x33   :  { %627 = vmatprep.mubr.bf16.mxu0 %v677_v14 }
  0x3a   :  { %628 = vmatmul.mubr.bf16.gmra.mrb[12].mxu0 %v678_v15 }
  0xf5   :  { %v617_v17 = vpop.f32.mrb[0].mxu0 }
  0xf6   :  { %v200_v18 = vpop.f32.mrb[1].mxu0 }
  0xf7   :  { %v618_v19 = vpop.f32.mrb[2].mxu0 }
  0xf8   :  { %v264_v20 = vpack.c.bf16 %v618_v19, %v617_v17  ;;  %v203_v21 = vpop.f32.mrb[3].mxu0 }
  0xf9   :  { %v263_v22 = vpack.c.bf16 %v203_v21, %v200_v18 }
  0xfb   :  { %631 = vmatprep.subr.bf16.mxu1 %v263_v22 }
  0xfc   :  { %632 = vmatpush3.bf16.msra.mxu1 %v263_v22 }
  0xfd   :  { %v621_v23 = vpop.f32.mrb[4].mxu0  ;;  %633 = vmatprep.subr.bf16.mxu1 %v264_v20 }
  0xfe   :  { %v216_v24 = vpop.f32.mrb[5].mxu0 }
  0xff   :  { %v622_v25 = vpop.f32.mrb[6].mxu0 }
 0x100   :  { %v266_v26 = vpack.c.bf16 %v622_v25, %v621_v23  ;;  %v219_v27 = vpop.f32.mrb[7].mxu0  ;;  %634 = vmatpush3.bf16.msra.mxu1 %v264_v20 }
 0x101   :  { %v265_v28 = vpack.c.bf16 %v219_v27, %v216_v24 }
 0x103   :  { %635 = vmatprep.subr.bf16.mxu1 %v265_v28 }
 0x104   :  { %636 = vmatpush3.bf16.msra.mxu1 %v265_v28 }
 0x105   :  { %v625_v29 = vpop.f32.mrb[8].mxu0  ;;  %637 = vmatprep.subr.bf16.mxu1 %v266_v26 }
 0x106   :  { %v232_v30 = vpop.f32.mrb[9].mxu0 }
 0x107   :  { %v626_v31 = vpop.f32.mrb[10].mxu0 }
 0x108   :  { %v268_v32 = vpack.c.bf16 %v626_v31, %v625_v29  ;;  %v235_v33 = vpop.f32.mrb[11].mxu0  ;;  %638 = vmatpush3.bf16.msra.mxu1 %v266_v26 }
 0x109   :  { %v267_v34 = vpack.c.bf16 %v235_v33, %v232_v30 }
 0x10b   :  { %639 = vmatprep.subr.bf16.mxu1 %v267_v34 }
 0x10c   :  { %640 = vmatpush3.bf16.msra.mxu1 %v267_v34 }
 0x10d   :  { %v629_v35 = vpop.f32.mrb[12].mxu0  ;;  %641 = vmatprep.subr.bf16.mxu1 %v268_v32 }
 0x10e   :  { %v248_v36 = vpop.f32.mrb[13].mxu0 }
 0x10f   :  { %v630_v37 = vpop.f32.mrb[14].mxu0 }
 0x110   :  { %v270_v38 = vpack.c.bf16 %v630_v37, %v629_v35  ;;  %v251_v39 = vpop.f32.mrb[15].mxu0  ;;  %642 = vmatpush3.bf16.msra.mxu1 %v268_v32 }
 0x111   :  { %v269_v40 = vpack.c.bf16 %v251_v39, %v248_v36 }
 0x113   :  { %643 = vmatprep.subr.bf16.mxu1 %v269_v40 }
 0x114   :  { %644 = vmatpush3.bf16.msra.mxu1 %v269_v40 }
 0x115   :  { %645 = vmatprep.subr.bf16.mxu1 %v270_v38 }
 0x118   :  { %646 = vmatpush3.bf16.msra.mxu1 %v270_v38 }
 0x11b   :  { %648 = vmatmul.mubr.bf16.vlgmr.msra.gmra.mrb[0].mxu1 %v680_v41 }
 0x11c   :  { %651 = vmatprep.mubr.bf16.mxu1 %v681_v42 }
 0x123   :  { %652 = vmatmul.mubr.bf16.gmra.mrb[4].mxu1 %v682_v43 }
 0x124   :  { %655 = vmatprep.mubr.bf16.mxu1 %v683_v44 }
 0x12b   :  { %656 = vmatmul.mubr.bf16.gmra.mrb[8].mxu1 %v684_v45 }
 0x12c   :  { %659 = vmatprep.mubr.bf16.mxu1 %v685_v46 }
 0x133   :  { %660 = vmatmul.mubr.bf16.gmra.mrb[12].mxu1 %v686_v47 }
 0x1ee   :  { %v649_v49 = vpop.f32.mrb[0].mxu1 }
 0x1ef   :  { %v508_v50 = vadd.f32 %v649_v49, %v566_v48  ;;  %v385_v51 = vpop.f32.mrb[1].mxu1 }
 0x1f0   :  { %v506_v52 = vadd.f32 %v566_v48, %v385_v51  ;;  %v650_v53 = vpop.f32.mrb[2].mxu1 }
 0x1f1   :  { %524 = vst [vmem:[%s839_s4 + $0x10] sm:$0xff] %v508_v50  ;;  %v509_v54 = vadd.f32 %v650_v53, %v566_v48  ;;  %v388_v55 = vpop.f32.mrb[3].mxu1 }
 0x1f2   :  { %522 = vst [vmem:[%s839_s4] sm:$0xff] %v506_v52  ;;  %v507_v56 = vadd.f32 %v566_v48, %v388_v55 }
 0x1f3   :  { %525 = vst [vmem:[%s839_s4 + $0x18] sm:$0xff] %v509_v54 }
 0x1f4   :  { %523 = vst [vmem:[%s839_s4 + $0x8] sm:$0xff] %v507_v56 }
 0x1f6   :  { %v653_v57 = vpop.f32.mrb[4].mxu1 }
 0x1f7   :  { %v512_v58 = vadd.f32 %v653_v57, %v566_v48  ;;  %v401_v59 = vpop.f32.mrb[5].mxu1 }
 0x1f8   :  { %v510_v60 = vadd.f32 %v566_v48, %v401_v59  ;;  %v654_v61 = vpop.f32.mrb[6].mxu1 }
 0x1f9   :  { %528 = vst [vmem:[%s839_s4 + $0x30] sm:$0xff] %v512_v58  ;;  %v513_v62 = vadd.f32 %v654_v61, %v566_v48  ;;  %v404_v63 = vpop.f32.mrb[7].mxu1 }
 0x1fa   :  { %526 = vst [vmem:[%s839_s4 + $0x20] sm:$0xff] %v510_v60  ;;  %v511_v0 = vadd.f32 %v566_v48, %v404_v63 }
 0x1fb   :  { %529 = vst [vmem:[%s839_s4 + $0x38] sm:$0xff] %v513_v62 }
 0x1fc   :  { %527 = vst [vmem:[%s839_s4 + $0x28] sm:$0xff] %v511_v0 }
 0x1fe   :  { %v657_v1 = vpop.f32.mrb[8].mxu1 }
 0x1ff   :  { %v516_v2 = vadd.f32 %v657_v1, %v566_v48  ;;  %v417_v3 = vpop.f32.mrb[9].mxu1 }
 0x200   :  { %v514_v4 = vadd.f32 %v566_v48, %v417_v3  ;;  %v658_v5 = vpop.f32.mrb[10].mxu1 }
 0x201   :  { %532 = vst [vmem:[%s839_s4 + $0x50] sm:$0xff] %v516_v2  ;;  %v517_v6 = vadd.f32 %v658_v5, %v566_v48  ;;  %v420_v7 = vpop.f32.mrb[11].mxu1 }
 0x202   :  { %530 = vst [vmem:[%s839_s4 + $0x40] sm:$0xff] %v514_v4  ;;  %v515_v8 = vadd.f32 %v566_v48, %v420_v7 }
 0x203   :  { %533 = vst [vmem:[%s839_s4 + $0x58] sm:$0xff] %v517_v6 }
 0x204   :  { %531 = vst [vmem:[%s839_s4 + $0x48] sm:$0xff] %v515_v8 }
 0x206   :  { %v661_v9 = vpop.f32.mrb[12].mxu1 }
 0x207   :  { %v520_v10 = vadd.f32 %v661_v9, %v566_v48  ;;  %v433_v11 = vpop.f32.mrb[13].mxu1 }
 0x208   :  { %v518_v12 = vadd.f32 %v566_v48, %v433_v11  ;;  %v662_v13 = vpop.f32.mrb[14].mxu1 }
 0x209   :  { %536 = vst [vmem:[%s839_s4 + $0x70] sm:$0xff] %v520_v10  ;;  %v521_v14 = vadd.f32 %v662_v13, %v566_v48  ;;  %v436_v15 = vpop.f32.mrb[15].mxu1 }
 0x20a   :  { %534 = vst [vmem:[%s839_s4 + $0x60] sm:$0xff] %v518_v12  ;;  %v519_v16 = vadd.f32 %v566_v48, %v436_v15 }
 0x20b   :  { %537 = vst [vmem:[%s839_s4 + $0x78] sm:$0xff] %v521_v14 }
 0x20c   :  { %535 = vst [vmem:[%s839_s4 + $0x68] sm:$0xff] %v519_v16 }

// kernel: gcn_large_forward.5
= control target key start
LH: loop header
LB: loop body
LE: loop exit
PB: predicated region body
PF: predicated region fallthrough
CT: control target
= control target key end

     0   :  { %s970_s2 = inlined_call_operand.vmem [shape: bf16[128,128], index: 2, kind: input, shape index: {}]   ;;  %s971_s1 = inlined_call_operand.vmem [shape: bf16[128,128], index: 1, kind: input, shape index: {}]   ;;  %s972_s0 = inlined_call_operand.vmem [shape: bf16[128,128], index: 0, kind: input, shape index: {}]   ;;  %s973_s3 = inlined_call_operand.vmem [shape: f32[1,128], index: 3, kind: input, shape index: {}]   ;;  %s974_s4 = inlined_call_operand.vmem [shape: bf16[128,128], index: 4, kind: output, shape index: {}]  }
   0x1   :  { %v822_v0 = vld [vmem:[%s970_s2] sm:$0xff]   ;;  %v823_v1 = vld [vmem:[%s970_s2 + $0x8] sm:$0xff]   ;;  %v824_v2 = vld [vmem:[%s970_s2 + $0x10] sm:$0xff]  }
   0x2   :  { %758 = vmatprep.subr.bf16.mxu0 %v822_v0  ;;  %v825_v3 = vld [vmem:[%s970_s2 + $0x18] sm:$0xff]   ;;  %v830_v4 = vld [vmem:[%s971_s1] sm:$0xff]   ;;  %v827_v6 = vld [vmem:[%s970_s2 + $0x28] sm:$0xff]  }
   0x3   :  { %759 = vmatpush3.bf16.msra.mxu0 %v822_v0  ;;  %774 = vmatprep.mubr.bf16.mxu0 %v830_v4  ;;  %v826_v5 = vld [vmem:[%s970_s2 + $0x20] sm:$0xff]   ;;  %v828_v7 = vld [vmem:[%s970_s2 + $0x30] sm:$0xff]   ;;  %v829_v8 = vld [vmem:[%s970_s2 + $0x38] sm:$0xff]  }
   0x4   :  { %760 = vmatprep.subr.bf16.mxu0 %v823_v1  ;;  %v831_v9 = vld [vmem:[%s971_s1 + $0x8] sm:$0xff]   ;;  %v832_v10 = vld [vmem:[%s971_s1 + $0x10] sm:$0xff]   ;;  %v833_v11 = vld [vmem:[%s971_s1 + $0x18] sm:$0xff]  }
   0x5   :  { %v834_v12 = vld [vmem:[%s971_s1 + $0x20] sm:$0xff]   ;;  %v835_v13 = vld [vmem:[%s971_s1 + $0x28] sm:$0xff]   ;;  %v836_v14 = vld [vmem:[%s971_s1 + $0x30] sm:$0xff]  }
   0x6   :  { %v837_v15 = vld [vmem:[%s971_s1 + $0x38] sm:$0xff]   ;;  %v838_v16 = vld [vmem:[%s972_s0] sm:$0xff]   ;;  %v839_v41 = vld [vmem:[%s972_s0 + $0x8] sm:$0xff]  }
   0x7   :  { %761 = vmatpush3.bf16.msra.mxu0 %v823_v1  ;;  %806 = vmatprep.mubr.bf16.mxu1 %v838_v16  ;;  %v840_v42 = vld [vmem:[%s972_s0 + $0x10] sm:$0xff]   ;;  %v841_v43 = vld [vmem:[%s972_s0 + $0x18] sm:$0xff]   ;;  %v842_v44 = vld [vmem:[%s972_s0 + $0x20] sm:$0xff]  }
   0x8   :  { %762 = vmatprep.subr.bf16.mxu0 %v824_v2  ;;  %v843_v45 = vld [vmem:[%s972_s0 + $0x28] sm:$0xff]   ;;  %v844_v46 = vld [vmem:[%s972_s0 + $0x30] sm:$0xff]   ;;  %v845_v47 = vld [vmem:[%s972_s0 + $0x38] sm:$0xff]  }
   0x9   :  { %v646_v48 = vld [vmem:[%s973_s3] ss:$0 sm:$0xff] }
   0xb   :  { %763 = vmatpush3.bf16.msra.mxu0 %v824_v2 }
   0xc   :  { %764 = vmatprep.subr.bf16.mxu0 %v825_v3 }
   0xf   :  { %765 = vmatpush3.bf16.msra.mxu0 %v825_v3 }
  0x10   :  { %766 = vmatprep.subr.bf16.mxu0 %v826_v5 }
  0x13   :  { %767 = vmatpush3.bf16.msra.mxu0 %v826_v5 }
  0x14   :  { %768 = vmatprep.subr.bf16.mxu0 %v827_v6 }
  0x17   :  { %769 = vmatpush3.bf16.msra.mxu0 %v827_v6 }
  0x18   :  { %770 = vmatprep.subr.bf16.mxu0 %v828_v7 }
  0x1b   :  { %771 = vmatpush3.bf16.msra.mxu0 %v828_v7 }
  0x1c   :  { %772 = vmatprep.subr.bf16.mxu0 %v829_v8 }
  0x1f   :  { %773 = vmatpush3.bf16.msra.mxu0 %v829_v8 }
  0x22   :  { %775 = vmatmul.mubr.bf16.vlgmr.msra.gmra.mrb[0].mxu0 %v831_v9 }
  0x23   :  { %778 = vmatprep.mubr.bf16.mxu0 %v832_v10 }
  0x2a   :  { %779 = vmatmul.mubr.bf16.gmra.mrb[4].mxu0 %v833_v11 }
  0x2b   :  { %782 = vmatprep.mubr.bf16.mxu0 %v834_v12 }
  0x32   :  { %783 = vmatmul.mubr.bf16.gmra.mrb[8].mxu0 %v835_v13 }
  0x33   :  { %786 = vmatprep.mubr.bf16.mxu0 %v836_v14 }
  0x3a   :  { %787 = vmatmul.mubr.bf16.gmra.mrb[12].mxu0 %v837_v15 }
  0xf5   :  { %v776_v17 = vpop.f32.mrb[0].mxu0 }
  0xf6   :  { %v200_v18 = vpop.f32.mrb[1].mxu0 }
  0xf7   :  { %v777_v19 = vpop.f32.mrb[2].mxu0 }
  0xf8   :  { %v264_v20 = vpack.c.bf16 %v777_v19, %v776_v17  ;;  %v203_v21 = vpop.f32.mrb[3].mxu0 }
  0xf9   :  { %v263_v22 = vpack.c.bf16 %v203_v21, %v200_v18 }
  0xfb   :  { %790 = vmatprep.subr.bf16.mxu1 %v263_v22 }
  0xfc   :  { %791 = vmatpush3.bf16.msra.mxu1 %v263_v22 }
  0xfd   :  { %v780_v23 = vpop.f32.mrb[4].mxu0  ;;  %792 = vmatprep.subr.bf16.mxu1 %v264_v20 }
  0xfe   :  { %v216_v24 = vpop.f32.mrb[5].mxu0 }
  0xff   :  { %v781_v25 = vpop.f32.mrb[6].mxu0 }
 0x100   :  { %v266_v26 = vpack.c.bf16 %v781_v25, %v780_v23  ;;  %v219_v27 = vpop.f32.mrb[7].mxu0  ;;  %793 = vmatpush3.bf16.msra.mxu1 %v264_v20 }
 0x101   :  { %v265_v28 = vpack.c.bf16 %v219_v27, %v216_v24 }
 0x103   :  { %794 = vmatprep.subr.bf16.mxu1 %v265_v28 }
 0x104   :  { %795 = vmatpush3.bf16.msra.mxu1 %v265_v28 }
 0x105   :  { %v784_v29 = vpop.f32.mrb[8].mxu0  ;;  %796 = vmatprep.subr.bf16.mxu1 %v266_v26 }
 0x106   :  { %v232_v30 = vpop.f32.mrb[9].mxu0 }
 0x107   :  { %v785_v31 = vpop.f32.mrb[10].mxu0 }
 0x108   :  { %v268_v32 = vpack.c.bf16 %v785_v31, %v784_v29  ;;  %v235_v33 = vpop.f32.mrb[11].mxu0  ;;  %797 = vmatpush3.bf16.msra.mxu1 %v266_v26 }
 0x109   :  { %v267_v34 = vpack.c.bf16 %v235_v33, %v232_v30 }
 0x10b   :  { %798 = vmatprep.subr.bf16.mxu1 %v267_v34 }
 0x10c   :  { %799 = vmatpush3.bf16.msra.mxu1 %v267_v34 }
 0x10d   :  { %v788_v35 = vpop.f32.mrb[12].mxu0  ;;  %800 = vmatprep.subr.bf16.mxu1 %v268_v32 }
 0x10e   :  { %v248_v36 = vpop.f32.mrb[13].mxu0 }
 0x10f   :  { %v789_v37 = vpop.f32.mrb[14].mxu0 }
 0x110   :  { %v270_v38 = vpack.c.bf16 %v789_v37, %v788_v35  ;;  %v251_v39 = vpop.f32.mrb[15].mxu0  ;;  %801 = vmatpush3.bf16.msra.mxu1 %v268_v32 }
 0x111   :  { %v269_v40 = vpack.c.bf16 %v251_v39, %v248_v36 }
 0x113   :  { %802 = vmatprep.subr.bf16.mxu1 %v269_v40 }
 0x114   :  { %803 = vmatpush3.bf16.msra.mxu1 %v269_v40 }
 0x115   :  { %804 = vmatprep.subr.bf16.mxu1 %v270_v38 }
 0x118   :  { %805 = vmatpush3.bf16.msra.mxu1 %v270_v38 }
 0x11b   :  { %807 = vmatmul.mubr.bf16.vlgmr.msra.gmra.mrb[0].mxu1 %v839_v41 }
 0x11c   :  { %810 = vmatprep.mubr.bf16.mxu1 %v840_v42 }
 0x123   :  { %811 = vmatmul.mubr.bf16.gmra.mrb[4].mxu1 %v841_v43 }
 0x124   :  { %814 = vmatprep.mubr.bf16.mxu1 %v842_v44 }
 0x12b   :  { %815 = vmatmul.mubr.bf16.gmra.mrb[8].mxu1 %v843_v45 }
 0x12c   :  { %818 = vmatprep.mubr.bf16.mxu1 %v844_v46 }
 0x133   :  { %819 = vmatmul.mubr.bf16.gmra.mrb[12].mxu1 %v845_v47 }
 0x1ee   :  { %v808_v49 = vpop.f32.mrb[0].mxu1 }
 0x1ef   :  { %v508_v50 = vadd.f32 %v808_v49, %v646_v48  ;;  %v385_v51 = vpop.f32.mrb[1].mxu1 }
 0x1f0   :  { %v506_v52 = vadd.f32 %v646_v48, %v385_v51  ;;  %v809_v53 = vpop.f32.mrb[2].mxu1 }
 0x1f1   :  { %v509_v54 = vadd.f32 %v809_v53, %v646_v48  ;;  %v388_v55 = vpop.f32.mrb[3].mxu1  ;;  %v524_v57 = vmax.f32 %v508_v50, 0.0 }
 0x1f2   :  { %v507_v56 = vadd.f32 %v646_v48, %v388_v55  ;;  %v522_v59 = vmax.f32 %v506_v52, 0.0 }
 0x1f3   :  { %v525_v58 = vmax.f32 %v509_v54, 0.0 }
 0x1f4   :  { %v523_v60 = vmax.f32 %v507_v56, 0.0 }
 0x1f5   :  { %v687_v61 = vpack.c.bf16 %v525_v58, %v524_v57 }
 0x1f6   :  { %v682_v62 = vpack.c.bf16 %v523_v60, %v522_v59  ;;  %v812_v63 = vpop.f32.mrb[4].mxu1 }
 0x1f7   :  { %719 = vst [vmem:[%s974_s4 + $0x8] sm:$0xff] %v687_v61   ;;  %v512_v0 = vadd.f32 %v812_v63, %v646_v48  ;;  %v401_v1 = vpop.f32.mrb[5].mxu1 }
 0x1f8   :  { %683 = vst [vmem:[%s974_s4] sm:$0xff] %v682_v62   ;;  %v510_v2 = vadd.f32 %v646_v48, %v401_v1  ;;  %v813_v3 = vpop.f32.mrb[6].mxu1 }
 0x1f9   :  { %v513_v4 = vadd.f32 %v813_v3, %v646_v48  ;;  %v404_v5 = vpop.f32.mrb[7].mxu1  ;;  %v528_v7 = vmax.f32 %v512_v0, 0.0 }
 0x1fa   :  { %v511_v6 = vadd.f32 %v646_v48, %v404_v5  ;;  %v526_v9 = vmax.f32 %v510_v2, 0.0 }
 0x1fb   :  { %v529_v8 = vmax.f32 %v513_v4, 0.0 }
 0x1fc   :  { %v527_v10 = vmax.f32 %v511_v6, 0.0 }
 0x1fd   :  { %v697_v11 = vpack.c.bf16 %v529_v8, %v528_v7 }
 0x1fe   :  { %v692_v12 = vpack.c.bf16 %v527_v10, %v526_v9  ;;  %v816_v13 = vpop.f32.mrb[8].mxu1 }
 0x1ff   :  { %721 = vst [vmem:[%s974_s4 + $0x18] sm:$0xff] %v697_v11   ;;  %v516_v14 = vadd.f32 %v816_v13, %v646_v48  ;;  %v417_v15 = vpop.f32.mrb[9].mxu1 }
 0x200   :  { %720 = vst [vmem:[%s974_s4 + $0x10] sm:$0xff] %v692_v12   ;;  %v514_v16 = vadd.f32 %v646_v48, %v417_v15  ;;  %v817_v17 = vpop.f32.mrb[10].mxu1 }
 0x201   :  { %v517_v18 = vadd.f32 %v817_v17, %v646_v48  ;;  %v420_v19 = vpop.f32.mrb[11].mxu1  ;;  %v532_v21 = vmax.f32 %v516_v14, 0.0 }
 0x202   :  { %v515_v20 = vadd.f32 %v646_v48, %v420_v19  ;;  %v530_v23 = vmax.f32 %v514_v16, 0.0 }
 0x203   :  { %v533_v22 = vmax.f32 %v517_v18, 0.0 }
 0x204   :  { %v531_v24 = vmax.f32 %v515_v20, 0.0 }
 0x205   :  { %v707_v25 = vpack.c.bf16 %v533_v22, %v532_v21 }
 0x206   :  { %v702_v26 = vpack.c.bf16 %v531_v24, %v530_v23  ;;  %v820_v27 = vpop.f32.mrb[12].mxu1 }
 0x207   :  { %723 = vst [vmem:[%s974_s4 + $0x28] sm:$0xff] %v707_v25   ;;  %v520_v28 = vadd.f32 %v820_v27, %v646_v48  ;;  %v433_v29 = vpop.f32.mrb[13].mxu1 }
 0x208   :  { %722 = vst [vmem:[%s974_s4 + $0x20] sm:$0xff] %v702_v26   ;;  %v518_v30 = vadd.f32 %v646_v48, %v433_v29  ;;  %v821_v31 = vpop.f32.mrb[14].mxu1 }
 0x209   :  { %v521_v32 = vadd.f32 %v821_v31, %v646_v48  ;;  %v436_v33 = vpop.f32.mrb[15].mxu1  ;;  %v536_v35 = vmax.f32 %v520_v28, 0.0 }
 0x20a   :  { %v519_v34 = vadd.f32 %v646_v48, %v436_v33  ;;  %v534_v37 = vmax.f32 %v518_v30, 0.0 }
 0x20b   :  { %v537_v36 = vmax.f32 %v521_v32, 0.0 }
 0x20c   :  { %v535_v38 = vmax.f32 %v519_v34, 0.0 }
 0x20d   :  { %v717_v39 = vpack.c.bf16 %v537_v36, %v536_v35 }
 0x20e   :  { %v712_v40 = vpack.c.bf16 %v535_v38, %v534_v37 }
 0x20f   :  { %725 = vst [vmem:[%s974_s4 + $0x38] sm:$0xff] %v717_v39  }
 0x210   :  { %724 = vst [vmem:[%s974_s4 + $0x30] sm:$0xff] %v712_v40  }

</bundles_post_ra>
